<compile_context>
chip_gen: v7x
topology: tpu7x:2x2x1
jax: 0.10.0
libtpu: 0.0.40
codegen_flags: <defaults>
</compile_context>

<pallas_src>
import jax
import jax.numpy as jnp
from jax.experimental import pallas as pl
from jax.experimental.pallas import tpu as pltpu


# Conservative double-buffered weight-slab budget (fits every generation's
# scoped VMEM default without needing vmem_limit_bytes overrides).
_VMEM_BUDGET_BYTES = 12 * 1024 * 1024


# --------------------------------------------------------------------------
# Kernels
# --------------------------------------------------------------------------
def _pooler_kernel_single(x_ref, w_ref, b_ref, o_ref):
    """Single streaming pass over the weight (no K grid, no accumulator).

    x_ref: (B, H)    [CLS] activations, resident across the N grid
    w_ref: (H, tn)   weight slab, (in, out) layout -> transpose-free MXU matmul
    b_ref: (1, tn)   bias slice
    o_ref: (B, tn)   lane-dense output tile
    """
    y = jnp.dot(x_ref[...], w_ref[...], preferred_element_type=jnp.float32)
    y = y + b_ref[...].astype(jnp.float32)
    o_ref[...] = jnp.tanh(y).astype(o_ref.dtype)   # tanh runs on the EUP


def _pooler_kernel_accum(x_ref, w_ref, b_ref, o_ref, acc_ref):
    """Fallback for very large H: K grid (last, 'arbitrary') + f32 accumulator."""
    k = pl.program_id(1)

    @pl.when(k == 0)
    def _():
        acc_ref[...] = jnp.zeros_like(acc_ref)

    acc_ref[...] += jnp.dot(x_ref[...], w_ref[...],
                            preferred_element_type=jnp.float32)

    @pl.when(k == pl.num_programs(1) - 1)
    def _():
        y = acc_ref[...] + b_ref[...].astype(jnp.float32)
        o_ref[...] = jnp.tanh(y).astype(o_ref.dtype)


# --------------------------------------------------------------------------
# Tiling helpers
# --------------------------------------------------------------------------
def _validate_tile(name, t, dim):
    if dim % t != 0:
        raise ValueError(f"{name}={t} must divide H={dim}")
    # Lane-dim blocking rule: multiple of 128 or the full dimension, otherwise
    # the store path degrades to masked partial vst (4x+ penalty) or lowering fails.
    if t != dim and t % 128 != 0:
        raise ValueError(f"{name}={t} must be a multiple of 128 (or equal H={dim})")


def _pick_tn(H):
    # Prefer >= 2 N tiles so v7x's two TensorCores each stream half the weight.
    if (H // 2) >= 128 and (H // 2) % 128 == 0 and H % (H // 2) == 0:
        return H // 2
    for t in (512, 256, 128):
        if H % t == 0:
            return t
    return H


def _pick_tk(H, tn, itemsize):
    # Full-H K tile (single streaming pass) whenever the double-buffered
    # (H, tn) weight slab fits the conservative VMEM budget.
    if 2 * H * tn * itemsize <= _VMEM_BUDGET_BYTES:
        return H
    for t in (2048, 1024, 512, 256, 128):
        if H % t == 0 and 2 * t * tn * itemsize <= _VMEM_BUDGET_BYTES:
            return t
    return H  # tiny H always fits; unreachable in practice


# --------------------------------------------------------------------------
# Wrapper
# --------------------------------------------------------------------------
def bert_pooler(hidden_states, weight, bias, *, tile_n=None, tile_k=None):
    """BertPooler forward.

    hidden_states: (B, S, H)
    weight:        (H, H)   PyTorch nn.Linear layout (out_features, in_features)
    bias:          (H,)
    returns:       (B, H), same dtype as hidden_states
    """
    B, S, H = hidden_states.shape
    assert weight.shape == (H, H), weight.shape
    assert bias.shape == (H,), bias.shape

    # [CLS] slice: a tiny B*H read, kept outside the kernel (safe layout, one op).
    x0 = hidden_states[:, 0, :]                  # (B, H)
    # One-time relayout to (in, out) so the kernel's contraction is a plain
    # transpose-free MXU matmul.  In production this happens at param-load time.
    w_t = weight.T                               # (H_in, H_out)
    b2d = bias.reshape(1, H)

    itemsize = jnp.dtype(weight.dtype).itemsize
    tn = tile_n if tile_n is not None else _pick_tn(H)
    tk = tile_k if tile_k is not None else _pick_tk(H, tn, itemsize)
    _validate_tile("tile_n", tn, H)
    _validate_tile("tile_k", tk, H)

    out_shape = jax.ShapeDtypeStruct((B, H), hidden_states.dtype)

    if tk == H:
        # Single streaming pass over W: no K grid, no accumulator scratch.
        grid = (H // tn,)
        return pl.pallas_call(
            _pooler_kernel_single,
            out_shape=out_shape,
            grid_spec=pltpu.PrefetchScalarGridSpec(
                num_scalar_prefetch=0,
                grid=grid,
                in_specs=[
                    pl.BlockSpec((B, H), lambda n: (0, 0)),     # x0 resident
                    pl.BlockSpec((H, tn), lambda n: (0, n)),    # weight slab
                    pl.BlockSpec((1, tn), lambda n: (0, n)),    # bias slice
                ],
                out_specs=pl.BlockSpec((B, tn), lambda n: (0, n)),
            ),
            compiler_params=pltpu.CompilerParams(
                dimension_semantics=("parallel",),
            ),
        )(x0, w_t, b2d)

    # Fallback for very large H: reduction axis last, marked "arbitrary".
    grid = (H // tn, H // tk)
    return pl.pallas_call(
        _pooler_kernel_accum,
        out_shape=out_shape,
        grid_spec=pltpu.PrefetchScalarGridSpec(
            num_scalar_prefetch=0,
            grid=grid,
            in_specs=[
                pl.BlockSpec((B, tk), lambda n, k: (0, k)),     # x0 K-slice
                pl.BlockSpec((tk, tn), lambda n, k: (k, n)),    # W (K, N) tile
                pl.BlockSpec((1, tn), lambda n, k: (0, n)),     # bias slice
            ],
            out_specs=pl.BlockSpec((B, tn), lambda n, k: (0, n)),
            scratch_shapes=[pltpu.VMEM((B, tn), jnp.float32)],
        ),
        compiler_params=pltpu.CompilerParams(
            dimension_semantics=("parallel", "arbitrary"),
        ),
    )(x0, w_t, b2d)


# --------------------------------------------------------------------------
# Demo / self-test
# --------------------------------------------------------------------------
if __name__ == "__main__":
    # Small shapes consistent with the module (real config: H=1024, S=32).
    batch, seq, hidden = 2, 8, 256

    key = jax.random.PRNGKey(0)
    k_x, k_w, k_b = jax.random.split(key, 3)
    hidden_states = jax.random.normal(k_x, (batch, seq, hidden), dtype=jnp.float32)
    # Deterministic Linear params (stand-in for nn.Linear init), PyTorch layout.
    weight = jax.random.normal(k_w, (hidden, hidden), dtype=jnp.float32) * 0.02
    bias = jax.random.normal(k_b, (hidden,), dtype=jnp.float32) * 0.02

    # Pure-JAX reference: tanh(x0 @ W.T + b)
    x0 = hidden_states[:, 0, :]
    ref = jnp.tanh(x0 @ weight.T + bias)

    # 1) Default path: tn = H/2 (two "parallel" N tiles), tk = H (single pass).
    out = bert_pooler(hidden_states, weight, bias)
    out = jax.block_until_ready(out)
    assert out.shape == (batch, hidden) and out.dtype == hidden_states.dtype
    assert jnp.allclose(out, ref, atol=1e-5, rtol=1e-5)

    # 2) Accumulator fallback path (forced small tile_k) for coverage.
    out2 = bert_pooler(hidden_states, weight, bias, tile_n=128, tile_k=128)
    out2 = jax.block_until_ready(out2)
    assert jnp.allclose(out2, ref, atol=1e-5, rtol=1e-5)

    print("KERNEL_OK")
</pallas_src>

<mosaic_0001>
module attributes {stable_mosaic.version = 11 : i64} {
  func.func @_pooler_kernel_single(%arg0: i32, %arg1: memref<2x256xf32, #tpu.memory_space<vmem>>, %arg2: memref<256x128xf32, #tpu.memory_space<vmem>>, %arg3: memref<1x128xf32, #tpu.memory_space<vmem>>, %arg4: memref<2x128xf32, #tpu.memory_space<vmem>>) attributes {dimension_semantics = [#tpu.dimension_semantics<parallel>], iteration_bounds = array<i64: 2>, scalar_prefetch = 0 : i64, scratch_operands = 0 : i64, tpu.core_type = #tpu.core_type<tc>, window_params = [{pipeline_mode = #tpu.pipeline_mode<synchronous>, transform_indices = @transform_0, window_bounds = array<i64: 2, 256>}, {transform_indices = @transform_1, window_bounds = array<i64: 256, 128>}, {transform_indices = @transform_2, window_bounds = array<i64: 1, 128>}, {transform_indices = @transform_3, window_bounds = array<i64: 2, 128>}]} {
    %c0 = arith.constant 0 : index
    %c0_0 = arith.constant 0 : index
    %0 = vector.load %arg1[%c0, %c0_0] : memref<2x256xf32, #tpu.memory_space<vmem>>, vector<2x256xf32>
    %c0_1 = arith.constant 0 : index
    %c0_2 = arith.constant 0 : index
    %1 = vector.load %arg2[%c0_1, %c0_2] : memref<256x128xf32, #tpu.memory_space<vmem>>, vector<256x128xf32>
    %cst = arith.constant dense<0.000000e+00> : vector<2x128xf32>
    %2 = tpu.matmul %0, %1, %cst {dimension_numbers = #tpu.dot_dimension_numbers<[1], [0], [0], [1], [0, 0, 1, 1], [], []>} : vector<2x256xf32>, vector<256x128xf32>, vector<2x128xf32> -> vector<2x128xf32>
    %c0_3 = arith.constant 0 : index
    %c0_4 = arith.constant 0 : index
    %3 = vector.load %arg3[%c0_3, %c0_4] : memref<1x128xf32, #tpu.memory_space<vmem>>, vector<1x128xf32>
    %4 = vector.broadcast %3 : vector<1x128xf32> to vector<2x128xf32>
    %5 = arith.addf %2, %4 : vector<2x128xf32>
    %6 = math.tanh %5 : vector<2x128xf32>
    %c0_5 = arith.constant 0 : index
    %c0_6 = arith.constant 0 : index
    %7 = vector.load %arg4[%c0_5, %c0_6] : memref<2x128xf32, #tpu.memory_space<vmem>>, vector<2x128xf32>
    tpu.vector_store %arg4[%c0_5, %c0_6], %6 {strides = array<i32>} : memref<2x128xf32, #tpu.memory_space<vmem>>, vector<2x128xf32>,
    return
  }
  func.func @transform_0(%arg0: i32) -> (i32, i32) {
    %c0_i32 = arith.constant 0 : i32
    %c0_i32_0 = arith.constant 0 : i32
    %c0_i32_1 = arith.constant 0 : i32
    return %c0_i32, %c0_i32_0 : i32, i32
  }
  func.func @transform_1(%arg0: i32) -> (i32, i32) {
    %c0_i32 = arith.constant 0 : i32
    %c0_i32_0 = arith.constant 0 : i32
    return %c0_i32, %arg0 : i32, i32
  }
  func.func @transform_2(%arg0: i32) -> (i32, i32) {
    %c0_i32 = arith.constant 0 : i32
    %c0_i32_0 = arith.constant 0 : i32
    return %c0_i32, %arg0 : i32, i32
  }
  func.func @transform_3(%arg0: i32) -> (i32, i32) {
    %c0_i32 = arith.constant 0 : i32
    %c0_i32_0 = arith.constant 0 : i32
    return %c0_i32, %arg0 : i32, i32
  }
}

</mosaic_0001>

<bundles_post_ra>
// kernel: tpu_custom_call.1
= control target key start
LH: loop header
LB: loop body
LE: loop exit
PB: predicated region body
PF: predicated region fallthrough
CT: control target
= control target key end

     0   :  { %8 = vsyncpa [#allocation3], 0  ;;  %s980_s0 = inlined_call_operand.hbm [shape: f32[2,256], index: 0, kind: input, shape index: {}]   ;;  %s981_s1 = inlined_call_operand.hbm [shape: f32[256,256], index: 1, kind: input, shape index: {}]   ;;  %s982_s2 = inlined_call_operand.vmem [shape: f32[1,256], index: 2, kind: input, shape index: {}]   ;;  %s983_s3 = inlined_call_operand.hbm [shape: f32[2,256], index: 3, kind: output, shape index: {}]  }
   0x1   :  { %9 = vsyncpa [#allocation6], 0 }
   0x2   :  { %11 = vsyncpa [#allocation6 + $0x1], 0 }
   0x3   :  { %12 = vsyncpa [#allocation4], 0 }
   0x4   :  { %14 = vsyncpa [#allocation4 + $0x1], 0  ;;  %s744_s12 = smov 0   ;;  %s746_s13 = smov 0  }
   0x5   :  { %s748_s14 = smov 0   ;;  %s750_s15 = smov 0  }
   0x6 LB: > { %s765_s16 = sadd.s32 4294967295, %s716_s15   ;;  %s443_s17 = sadd.s32 4294967294, %s716_s15   ;;  %s716_s15 = sphi %s750_s15, %s1008_s15   ;;  %s712_s14 = sphi %s748_s14, %s1007_s14   ;;  %s708_s13 = sphi %s746_s13, %s1006_s13   ;;  %s704_s12 = sphi %s744_s12, %s1005_s12  }
   0x7   : > { %s769_s18 = sadd.s32 1, %s716_s15   ;;  %s48_s19 = sadd.s32 1, %s712_s14 }
   0x8   : > { %s45_s20 = ssub.s32 %s716_s15, %s769_s18  ;;  %p55_p0 = scmp.ne.s32.totalorder %s712_s14, %s708_s13 }
   0x9   : > { %p46_p1 = scmp.eq.s32.totalorder %s45_s20, 0  ;;  %p56_p2 = scmp.eq.s32.totalorder %s716_s15, 0 }
   0xa   : > { %p61_p3 = scmp.ne.s32.totalorder %s708_s13, %s704_s12  ;;  %p984_p4 = scmp.eq.s32.totalorder %s765_s16, 0 }
   0xb   : > { %s781_s21 = scalar_select %p46_p1, %s712_s14, %s48_s19  }
   0xc   : > { %p783_p5 = por %p56_p2, %p55_p0  ;;  %p789_p6 = por %p984_p4, %p61_p3 }
   0xd   : > { %p111_p7 = scmp.eq.s32.totalorder %s765_s16, 1  ;;  %p117_p8 = scmp.eq.s32.totalorder %s443_s17, 1 }
   0xe   : > { %s990_s23 = scalar_select %p789_p6, 1, 0 }
   0xf   : > { %p444_p9 = scmp.ge.s32.totalorder %s716_s15, 1  ;;  %p124_p10 = scmp.lt.s32.totalorder %s716_s15, 3 }
  0x10   : > { %p796_p11 = por %p111_p7, %p55_p0  ;;  %p800_p12 = por %p117_p8, %p61_p3 }
  0x11   : > { %p804_p13 = pnand %p444_p9, %p124_p10  ;;  %s718_s27 = smov [#allocation2]  }
  0x12   : > { %s991_s24 = scalar_select %p796_p11, 1, 0 }
  0x13   : > { %s992_s25 = scalar_select %p800_p12, 1, 0 }
  0x14   : > { %s993_s26 = scalar_select %p804_p13, 1, 0 }
  0x15   : > { %p534_p2 = pneg %p804_p13  ;;  %s137_s28 = sshll.u32 %s718_s27, 4  ;;  %s138_s28 = int_to_ptr.vmem [resolvable:$true] %s137_s28 }
  0x16   : > { %p547_p4 = scmp.lt.s32.totalorder %s716_s15, 2  ;;  %p994_p0 = scmp.eq.s32.totalorder %s765_s16, 0 }
  0x17   : > { %s148_s30 = sand.u32 1, %s712_s14   ;;  %s588_s8 = scalar_lea.hbm %s980_s0, 64 }
  0x18   : > { %p814_p7 = pnand %p534_p2, %p994_p0  ;;  %p821_p3 = pnand %p547_p4, %p783_p5 }
  0x19   : > { %s447_s5 = sshll.u32 %s148_s30, 8  ;;  %p589_p8 = scmp.ne.s32.totalorder %s980_s0, %s588_s8 }
  0x1a   : > { %s996_s4 = scalar_select %p821_p3, 1, 0 }
  0x1b   : > { %p590_p9 = pneg %p814_p7  ;;  %p595_p4 = scmp.lt.u32.totalorder %s588_s8, %s980_s0 }
  0x1d   : > { %p591_p10 = pnand %p590_p9, %p589_p8 }
  0x1f   : > { %p592_p2 = pneg %p591_p10 }
  0x21   : > { %p597_p5 = pnand %p595_p4, %p592_p2 }
  0x23   : > { %600 = shalt.err (!%p597_p5)
}
  0x24   : > { %s601_s19 = scalar_lea.vmem %s138_s28, 64  ;;  %p609_p11 = scmp.lt.s32.totalorder %s138_s28, %s138_s28 }
  0x25   : > { %p602_p0 = scmp.ne.s32.totalorder %s138_s28, %s601_s19  ;;  %p610_p6 = scmp.lt.s32.totalorder %s601_s19, %s601_s19 }
  0x27   : > { %p604_p1 = pnand %p602_p0, %p590_p9  ;;  %p611_p13 = por %p610_p6, %p609_p11 }
  0x29   : > { %p605_p12 = pneg %p604_p1 }
  0x2b   : > { %p612_p3 = pnand %p611_p13, %p605_p12 }
  0x2d   : > { %615 = shalt.err (!%p612_p3)
}
  0x2e   : > { %537 = dma.hbm_to_vmem [thread:$0]  (!%p814_p7), %s980_s0, 64, %s138_s28, [#allocation3]  }
  0x2f   : > { %s448_s27 = sshll.u32 %s716_s15, 7  ;;  %s152_s6 = scalar_lea.vmem [#allocation5], %s447_s5 }
  0x30   : > { %s158_s7 = sshll.u32 %s152_s6, 4  ;;  %s845_s10 = scalar_lea.hbm %s981_s1, %s448_s27  ;;  %s847_s7 = int_to_ptr.vmem [resolvable:$true] %s158_s7 }
  0x31   : > { %s849_s29 = scalar_lea.sflag [#allocation6], %s148_s30  ;;  %s616_s11 = scalar_lea.hbm %s845_s10, 4096 }
  0x32   : > { %p617_p6 = scmp.ne.s32.totalorder %s845_s10, %s616_s11  ;;  %p997_p11 = scmp.ne.s32.totalorder %s996_s4, 0 }
  0x33   : > { %s621_s17 = scalar_lea.hbm %s981_s1, 8192  ;;  %p622_p7 = scmp.lt.u32.totalorder %s845_s10, %s981_s1 }
  0x34   : > { %p618_p12 = pneg %p997_p11  ;;  %p623_p3 = scmp.lt.u32.totalorder %s621_s17, %s616_s11 }
  0x35   : > { %p625_p9 = scmp.lt.u32.totalorder %s616_s11, %s845_s10 }
  0x36   : > { %p619_p13 = pnand %p618_p12, %p617_p6  ;;  %p624_p8 = por %p623_p3, %p622_p7 }
  0x38   : > { %p620_p1 = pneg %p619_p13  ;;  %p626_p10 = por %p625_p9, %p624_p8 }
  0x3a   : > { %p627_p2 = pnand %p626_p10, %p620_p1 }
  0x3c   : > { %630 = shalt.err (!%p627_p2)
}
  0x3d   : > { %s631_s30 = scalar_lea.vmem %s847_s7, 4096  ;;  %s719_s22 = smov [#allocation5]  }
  0x3e   : > { %p632_p4 = scmp.ne.s32.totalorder %s847_s7, %s631_s30  ;;  %s636_s27 = sshll.u32 %s719_s22, 4  ;;  %s637_s27 = int_to_ptr.vmem [resolvable:$false] %s636_s27 }
  0x3f   : > { %s638_s6 = scalar_lea.vmem %s637_s27, 8192  ;;  %p639_p6 = scmp.lt.s32.totalorder %s847_s7, %s637_s27 }
  0x40   : > { %p634_p5 = pnand %p632_p4, %p618_p12  ;;  %p640_p13 = scmp.lt.s32.totalorder %s638_s6, %s631_s30 }
  0x42   : > { %p635_p0 = pneg %p634_p5  ;;  %p641_p7 = por %p640_p13, %p639_p6 }
  0x44   : > { %p642_p3 = pnand %p641_p7, %p635_p0 }
  0x46   : > { %645 = shalt.err (!%p642_p3)
}
  0x47   : > { %s720_s8 = smov 256   ;;  %s721_s9 = smov 128  }
  0x48   : > { %s722_s11 = smov 8   ;;  %p998_p12 = scmp.ne.s32.totalorder %s993_s26, 0 }
  0x49   : > { %541 = dma.hbm_to_vmem [thread:$0]  (!%p997_p11), %s845_s10, 4096, %s847_s7, %s849_s29, %s720_s8, %s721_s9, %s722_s11  }
  0x4a   : > { %176 = sbr.rel (%p998_p12) target bundleno = 363 (0x16b), region = 32  ;;  %p999_p1 = scmp.eq.s32.totalorder (!%p998_p12), %s765_s16, 0 }
  0x51   : > { %691 = dma.done.wait (%p999_p1), [#allocation3], 64   ;;  %p1000_p8 = pmov %p999_p1 }
  0x52   : > { %s884_s28 = sand.u32 1, %s708_s13   ;;  %p1001_p11 = scmp.ne.s32.totalorder %s990_s23, 0 }
  0x53   : > { %693 = vsyncadd (%p1000_p8), [#allocation3], 4294967232  ;;  %s451_s5 = sshll.u32 %s884_s28, 8  ;;  %s183_s17 = scalar_lea.sflag [#allocation6], %s884_s28 }
  0x54   : > { %s888_s19 = scalar_lea.vmem [#allocation5], %s451_s5 }
  0x55   : > { %695 = dma.done.wait (%p1001_p11), %s183_s17, 4096  }
  0x56   : > { %697 = vsyncadd (%p1001_p11), %s183_s17, 4294963200  ;;  %v232_v0 = vld [vmem:[%s888_s19 + $0x80] sm:$0xff]  ;;  %v233_v1 = vld [vmem:[%s888_s19 + $0x88] sm:$0xff]  ;;  %p212_p9 = scmp.lt.s32.totalorder %s765_s16, 1  ;;  %s452_s10 = sshll.u32 %s884_s28, 1 }
  0x57   : > { %v216_v2 = vld [vmem:[%s888_s19] sm:$0xff]  ;;  %v494_v3 = vpack.c.bf16 %v233_v1, %v232_v0  ;;  %v217_v4 = vld [vmem:[%s888_s19 + $0x8] sm:$0xff]  ;;  %v234_v5 = vld [vmem:[%s888_s19 + $0x90] sm:$0xff]  ;;  %s456_s29 = sshll.u32 %s765_s16, 5  ;;  %s211_s20 = scalar_lea.vmem [#allocation7], %s452_s10 }
  0x58   : > { %v235_v6 = vld [vmem:[%s888_s19 + $0x98] sm:$0xff]  ;;  %v496_v7 = vpack.c.bf16 %v217_v4, %v216_v2  ;;  %v218_v9 = vld [vmem:[%s888_s19 + $0x10] sm:$0xff]  ;;  %v236_v11 = vld [vmem:[%s888_s19 + $0xa0] sm:$0xff]  ;;  %s213_s23 = scalar_select %p212_p9, %s765_s16, 1 }
  0x59   : > { %v498_v8 = vpack.c.bf16 %v235_v6, %v234_v5  ;;  %v219_v10 = vld [vmem:[%s888_s19 + $0x18] sm:$0xff]  ;;  %495 = vmatprep.subr.bf16.mxu0 %v494_v3  ;;  %v237_v12 = vld [vmem:[%s888_s19 + $0xa8] sm:$0xff]  ;;  %v220_v15 = vld [vmem:[%s888_s19 + $0x20] sm:$0xff]  ;;  %s352_s30 = sshll.u32 %s211_s20, 4  ;;  %s936_s6 = scalar_lea.hbm %s983_s3, %s456_s29  ;;  %s938_s30 = int_to_ptr.vmem [resolvable:$true] %s352_s30 }
  0x5a   : > { %497 = vmatpush3.bf16.msra.mxu0 %v496_v7  ;;  %v500_v13 = vpack.c.bf16 %v219_v10, %v218_v9  ;;  %v502_v14 = vpack.c.bf16 %v237_v12, %v236_v11  ;;  %v221_v16 = vld [vmem:[%s888_s19 + $0x28] sm:$0xff]  ;;  %v238_v17 = vld [vmem:[%s888_s19 + $0xb0] sm:$0xff]  ;;  %v239_v18 = vld [vmem:[%s888_s19 + $0xb8] sm:$0xff]  ;;  %s214_s7 = scalar_lea.vmem %s982_s2, %s213_s23  ;;  %s339_s8 = scalar_lea.sflag [#allocation4], %s884_s28 }
  0x5b   : > { %499 = vmatprep.subr.bf16.mxu0 %v498_v8  ;;  %v504_v19 = vpack.c.bf16 %v221_v16, %v220_v15  ;;  %v506_v20 = vpack.c.bf16 %v239_v18, %v238_v17  ;;  %v222_v21 = vld [vmem:[%s888_s19 + $0x30] sm:$0xff]  ;;  %v223_v22 = vld [vmem:[%s888_s19 + $0x38] sm:$0xff]  ;;  %v240_v23 = vld [vmem:[%s888_s19 + $0xc0] sm:$0xff]  ;;  %s646_s9 = scalar_lea.vmem %s938_s30, 32  ;;  %p1002_p2 = scmp.ne.s32.totalorder %s991_s24, 0 }
  0x5c   : > { %v241_v24 = vld [vmem:[%s888_s19 + $0xc8] sm:$0xff]  ;;  %v454_v25 = vld.sshfl [vmem:[#allocation2] sm:$0x33 pattern:$0x76325410]  ;;  %v508_v27 = vpack.c.bf16 %v223_v22, %v222_v21  ;;  %v224_v29 = vld [vmem:[%s888_s19 + $0x40] sm:$0xff]  ;;  %p647_p10 = scmp.ne.s32.totalorder %s938_s30, %s646_s9 }
  0x5d   : > { %v263_v26 = vcombine.high %v454_v25, %v454_v25  ;;  %v510_v28 = vpack.c.bf16 %v241_v24, %v240_v23  ;;  %v225_v30 = vld [vmem:[%s888_s19 + $0x48] sm:$0xff]  ;;  %v242_v31 = vld [vmem:[%s888_s19 + $0xd0] sm:$0xff]  ;;  %v243_v32 = vld [vmem:[%s888_s19 + $0xd8] sm:$0xff]  ;;  %s723_s16 = smov [#allocation7]  }
  0x5e   : > { %501 = vmatpush3.bf16.msra.mxu0 %v500_v13  ;;  %v512_v33 = vpack.c.bf16 %v225_v30, %v224_v29  ;;  %v514_v34 = vpack.c.bf16 %v243_v32, %v242_v31  ;;  %v226_v35 = vld [vmem:[%s888_s19 + $0x50] sm:$0xff]  ;;  %v227_v36 = vld [vmem:[%s888_s19 + $0x58] sm:$0xff]  ;;  %v244_v37 = vld [vmem:[%s888_s19 + $0xe0] sm:$0xff]  ;;  %p648_p4 = pnand %p647_p10, %p1002_p2  ;;  %s650_s11 = sshll.u32 %s723_s16, 4  ;;  %s651_s11 = int_to_ptr.vmem [resolvable:$false] %s650_s11 }
  0x5f   : > { %503 = vmatprep.subr.bf16.mxu0 %v502_v14  ;;  %330 = vmatprep.mubr.f32.mxu0 %v263_v26  ;;  %v245_v38 = vld [vmem:[%s888_s19 + $0xe8] sm:$0xff]  ;;  %v516_v39 = vpack.c.bf16 %v227_v36, %v226_v35  ;;  %v228_v41 = vld [vmem:[%s888_s19 + $0x60] sm:$0xff]  ;;  %v246_v43 = vld [vmem:[%s888_s19 + $0xf0] sm:$0xff]  ;;  %s652_s5 = scalar_lea.vmem %s651_s11, 64  ;;  %p653_p0 = scmp.lt.s32.totalorder %s938_s30, %s651_s11 }
  0x60   : > { %v518_v40 = vpack.c.bf16 %v245_v38, %v244_v37  ;;  %v229_v42 = vld [vmem:[%s888_s19 + $0x68] sm:$0xff]  ;;  %v247_v44 = vld [vmem:[%s888_s19 + $0xf8] sm:$0xff]  ;;  %v230_v47 = vld [vmem:[%s888_s19 + $0x70] sm:$0xff]  ;;  %p649_p5 = pneg %p648_p4  ;;  %p654_p6 = scmp.lt.s32.totalorder %s652_s5, %s646_s9 }
  0x61   : > { %v520_v45 = vpack.c.bf16 %v229_v42, %v228_v41  ;;  %v522_v46 = vpack.c.bf16 %v247_v44, %v246_v43  ;;  %v231_v48 = vld [vmem:[%s888_s19 + $0x78] sm:$0xff] }
  0x62   : > { %505 = vmatpush3.bf16.msra.mxu0 %v504_v19  ;;  %v524_v49 = vpack.c.bf16 %v231_v48, %v230_v47  ;;  %v453_v51 = vld [vmem:[%s214_s7] ss:$0 sm:$0xff]  ;;  %p655_p13 = por %p654_p6, %p653_p0 }
  0x63   : > { %507 = vmatprep.subr.bf16.mxu0 %v506_v20 }
  0x64   : > { %p656_p7 = pnand %p655_p13, %p649_p5 }
  0x66   : > { %509 = vmatpush3.bf16.msra.mxu0 %v508_v27 }
  0x67   : > { %511 = vmatprep.subr.bf16.mxu0 %v510_v28 }
  0x6a   : > { %513 = vmatpush3.bf16.msra.mxu0 %v512_v33 }
  0x6b   : > { %515 = vmatprep.subr.bf16.mxu0 %v514_v34 }
  0x6e   : > { %517 = vmatpush3.bf16.msra.mxu0 %v516_v39 }
  0x6f   : > { %519 = vmatprep.subr.bf16.mxu0 %v518_v40 }
  0x72   : > { %521 = vmatpush3.bf16.msra.mxu0 %v520_v45 }
  0x73   : > { %523 = vmatprep.subr.bf16.mxu0 %v522_v46 }
  0x76   : > { %525 = vmatpush3.bf16.msra.mxu0 %v524_v49 }
  0x79   : > { %331 = vmatmul.mubr.f32.vlgmr.msra.gmra.mrb[0].mxu0 %v454_v25 }
 0x14c   : > { %v491_v50 = vpop.f32.mrb[0].mxu0 }
 0x14d   : > { %v492_v52 = vpop.f32.mrb[1].mxu0 }
 0x14e   : > { %v493_v53 = vadd.f32 %v492_v52, %v491_v50 }
 0x150   : > { %v333_v54 = vadd.f32 %v493_v53, %v453_v51 }
 0x152   : > { %586 = vtanh.f32 %v333_v54 }
 0x15c   : > { %v587_v55 = vpop.eup %586 }
 0x15d   : > { %337 = vst [vmem:[%s211_s20] sm:$0x3] %v587_v55 }
 0x15e   : > { %659 = shalt.err (!%p656_p7)
}
 0x15f   : > { %s660_s28 = scalar_lea.hbm %s936_s6, 32  ;;  %s664_s23 = scalar_lea.hbm %s983_s3, 64 }
 0x160   : > { %p661_p3 = scmp.ne.s32.totalorder %s936_s6, %s660_s28  ;;  %p665_p8 = scmp.lt.u32.totalorder %s936_s6, %s983_s3 }
 0x161   : > { %p666_p11 = scmp.lt.u32.totalorder %s664_s23, %s660_s28  ;;  %p668_p10 = scmp.lt.u32.totalorder %s660_s28, %s936_s6 }
 0x162   : > { %p662_p12 = pnand %p661_p3, %p1002_p2 }
 0x163   : > { %p667_p9 = por %p666_p11, %p665_p8 }
 0x164   : > { %p663_p1 = pneg %p662_p12 }
 0x165   : > { %p669_p4 = por %p668_p10, %p667_p9 }
 0x167   : > { %p670_p5 = pnand %p669_p4, %p663_p1 }
 0x169   : > { %673 = shalt.err (!%p670_p5)
}
 0x16a   : > { %532 = dma.vmem_to_hbm [thread:$0]  (%p1002_p2), %s938_s30, 32, %s936_s6, %s339_s8  }
 0x16b PF: > { %s364_s7 = sand.u32 1, %s704_s12   ;;  %p1003_p0 = scmp.ne.s32.totalorder %s992_s25, 0 }
 0x16c   : > { %p1004_p6 = scmp.ge.s32.totalorder %s716_s15, 2  ;;  %s365_s10 = scalar_lea.sflag [#allocation4], %s364_s7 }
 0x16e   : > { %p543_p13 = pnand %p1004_p6, %p1003_p0 }
 0x170   : > { %699 = dma.done.wait (!%p543_p13), %s365_s10, 32  }
 0x171   : > { %701 = vsyncadd (!%p543_p13), %s365_s10, 4294967264  ;;  %p17_p7 = scmp.ge.s32.totalorder %s769_s18, 4   ;;  %s1005_s12 = smov %s708_s13 }
 0x172   : > { %s1006_s13 = smov %s712_s14  ;;  %s1007_s14 = smov %s781_s21 }
 0x173   : > { %s1008_s15 = smov %s769_s18  ;;  %19 = sbr.rel (!%p17_p7) target bundleno = 6 (0x6), region = 85 }
 0x17a   :  { %370 = vsyncpa [#allocation3], 1 }
 0x17b   :  { %372 = vsyncpa [#allocation3 + $0x1], 1 }
 0x17c   :  { %373 = vsyncpa [#allocation6], 1 }
 0x17d   :  { %375 = vsyncpa [#allocation6 + $0x1], 1 }
 0x17e   :  { %376 = vsyncpa [#allocation4], 1 }
 0x17f   :  { %378 = vsyncpa [#allocation4 + $0x1], 1 }

</bundles_post_ra>
